<compile_context>
chip_gen: v7x
topology: tpu7x:2x2x1
jax: 0.10.0
libtpu: 0.0.40
codegen_flags: <defaults>
</compile_context>

<pallas_src>
import functools
import math

import jax
import jax.numpy as jnp
from jax.experimental import pallas as pl
from jax.experimental.pallas import tpu as pltpu

LN_EPS = 1e-5  # torch.nn.LayerNorm default

# Rows of the packed small-vector buffer.
ROW_BO, ROW_BM, ROW_G_IN, ROW_B_IN, ROW_G_OUT, ROW_B_OUT = range(6)


def _layernorm(x, g, b):
    mu = jnp.mean(x, axis=-1, keepdims=True)
    xc = x - mu
    var = jnp.mean(xc * xc, axis=-1, keepdims=True)
    return xc * jax.lax.rsqrt(var + LN_EPS) * g + b


def simple_layer_kernel(x_ref, mask_ref, wqkv_ref, wo_ref, wm_ref, vec_ref,
                        out_ref, *, num_heads):
    """One batch element per grid step.

    x_ref   : [1, S, E+1] f32   (last column is a constant 1 -> biases in wqkv)
    mask_ref: [S, S]      f32   additive causal mask
    wqkv_ref: [3H, E+1, d] bf16 per-head q/k/v projections (q pre-scaled)
    wo_ref  : [H, d, E]   bf16  per-head slices of the attention out-projection
    wm_ref  : [E, E]      bf16  module Linear weight
    vec_ref : [8, E]      f32   packed [bo, bm, g_in, b_in, g_out, b_out, 0, 0]
    out_ref : [1, S, E]   f32
    """
    H = num_heads
    xa = x_ref[0]                               # [S, E+1] f32
    S, E1 = xa.shape
    E = E1 - 1
    C = 3 * H

    x = xa[:, :E]                               # residual path stays f32
    xb = xa.astype(jnp.bfloat16)                # cast once

    # ---- fused per-head q/k/v projection: ONE batched matmul over c = 3H ----
    # scale and in-proj biases are already folded into wqkv (ones column of x).
    xc = jnp.broadcast_to(xb, (C, S, E1))                        # [3H, S, E+1]
    qkv = jnp.einsum('cse,ced->csd', xc, wqkv_ref[...],
                     preferred_element_type=jnp.float32)         # [3H, S, d]
    qkv = qkv.astype(jnp.bfloat16)
    q, k, v = qkv[:H], qkv[H:2 * H], qkv[2 * H:]                 # [H, S, d] each

    # ---- attention restricted to the live (head, S, S) blocks ----
    scores = jnp.einsum('hsd,htd->hst', q, k,
                        preferred_element_type=jnp.float32)      # [H, S, S]
    scores = scores + mask_ref[...][None, :, :]                  # broadcast over heads

    m = jnp.max(scores, axis=-1, keepdims=True)
    p = jnp.exp(scores - m)
    p = p / jnp.sum(p, axis=-1, keepdims=True)   # exact reciprocal; negligible cost here

    ctx = jnp.einsum('hst,htd->hsd', p.astype(jnp.bfloat16), v,
                     preferred_element_type=jnp.float32)         # [H, S, d]

    # ---- out-projection with the head concat folded into a batched matmul ----
    attn = jnp.sum(jnp.einsum('hsd,hde->hse', ctx.astype(jnp.bfloat16), wo_ref[...],
                              preferred_element_type=jnp.float32),
                   axis=0)                                       # [S, E]
    attn = attn + vec_ref[ROW_BO:ROW_BO + 1, :]

    # ---- residual -> LayerNorm_in -> Linear + ReLU -> LayerNorm_out ----
    h1 = _layernorm(x + attn,
                    vec_ref[ROW_G_IN:ROW_G_IN + 1, :],
                    vec_ref[ROW_B_IN:ROW_B_IN + 1, :])
    m1 = jnp.dot(h1.astype(jnp.bfloat16), wm_ref[...],
                 preferred_element_type=jnp.float32) + vec_ref[ROW_BM:ROW_BM + 1, :]
    m1 = jnp.maximum(m1, 0.0)
    out_ref[0] = _layernorm(m1,
                            vec_ref[ROW_G_OUT:ROW_G_OUT + 1, :],
                            vec_ref[ROW_B_OUT:ROW_B_OUT + 1, :])


def run_layer(x, mask, params, num_heads):
    B, S, E = x.shape
    H = num_heads
    d = E // H
    scale = 1.0 / math.sqrt(d)

    # [E,E] weight + [1,E] bias -> per-head [H, E+1, d] with the bias as the last
    # input row (consumed by the constant-one column appended to x).
    def heads_in(w, b):
        wh = w.reshape(E, H, d).transpose(1, 0, 2)     # [H, E, d]
        bh = b.reshape(1, H, d).transpose(1, 0, 2)     # [H, 1, d]
        return jnp.concatenate([wh, bh], axis=1)       # [H, E+1, d]

    wqkv = jnp.concatenate(
        [heads_in(params['wq'], params['bq']) * scale,   # 1/sqrt(d) folded into q
         heads_in(params['wk'], params['bk']),
         heads_in(params['wv'], params['bv'])],
        axis=0).astype(jnp.bfloat16)                     # [3H, E+1, d]
    wo_heads = params['wo'].reshape(H, d, E).astype(jnp.bfloat16)   # [H, d, E]
    wm = params['wm'].astype(jnp.bfloat16)                          # [E, E]

    # Pack the seven tiny row vectors into ONE (8, E) buffer -> one DMA, one tile.
    vecs = jnp.zeros((8, E), jnp.float32)
    for row, name in ((ROW_BO, 'bo'), (ROW_BM, 'bm'),
                      (ROW_G_IN, 'g_in'), (ROW_B_IN, 'b_in'),
                      (ROW_G_OUT, 'g_out'), (ROW_B_OUT, 'b_out')):
        vecs = vecs.at[row].set(params[name][0])

    # Constant-one feature column so q/k/v biases live inside wqkv.
    x_aug = jnp.concatenate([x, jnp.ones((B, S, 1), x.dtype)], axis=-1)  # [B,S,E+1]

    args = (x_aug, mask, wqkv, wo_heads, wm, vecs)

    flops = B * (2 * 3 * H * S * (E + 1) * d        # fused per-head qkv projection
                 + 2 * H * S * S * d * 2            # scores + p @ v
                 + 2 * H * S * d * E                # attention out-projection
                 + 2 * S * E * E)                   # module Linear
    transcendentals = B * (H * S * S + 2 * S)       # exp + the two LayerNorm rsqrts
    bytes_accessed = int(sum(int(a.size) * a.dtype.itemsize for a in args)
                         + B * S * E * 4)

    kernel = functools.partial(simple_layer_kernel, num_heads=H)

    out = pl.pallas_call(
        kernel,
        out_shape=jax.ShapeDtypeStruct((B, S, E), jnp.float32),
        grid=(B,),
        in_specs=[
            pl.BlockSpec((1, S, E + 1), lambda b: (b, 0, 0)),
            pl.BlockSpec((S, S), lambda b: (0, 0)),
            pl.BlockSpec((3 * H, E + 1, d), lambda b: (0, 0, 0)),
            pl.BlockSpec((H, d, E), lambda b: (0, 0, 0)),
            pl.BlockSpec((E, E), lambda b: (0, 0)),
            pl.BlockSpec((8, E), lambda b: (0, 0)),
        ],
        out_specs=pl.BlockSpec((1, S, E), lambda b: (b, 0, 0)),
        compiler_params=pltpu.CompilerParams(dimension_semantics=("parallel",)),
        cost_estimate=pl.CostEstimate(flops=int(flops),
                                      transcendentals=int(transcendentals),
                                      bytes_accessed=bytes_accessed),
    )(*args)
    return out


def init_params(key, E):
    keys = jax.random.split(key, 14)

    def w(k, shape, scale=0.02):
        return (scale * jax.random.normal(k, shape)).astype(jnp.float32)

    p = {}
    p['wq'] = w(keys[0], (E, E)); p['bq'] = w(keys[1], (1, E))
    p['wk'] = w(keys[2], (E, E)); p['bk'] = w(keys[3], (1, E))
    p['wv'] = w(keys[4], (E, E)); p['bv'] = w(keys[5], (1, E))
    p['wo'] = w(keys[6], (E, E)); p['bo'] = w(keys[7], (1, E))
    p['wm'] = w(keys[8], (E, E)); p['bm'] = w(keys[9], (1, E))   # nn.Linear in module
    # LayerNorm affine params (torch init is ones/zeros; perturbed for coverage)
    p['g_in'] = (1.0 + 0.05 * jax.random.normal(keys[10], (1, E))).astype(jnp.float32)
    p['b_in'] = (0.05 * jax.random.normal(keys[11], (1, E))).astype(jnp.float32)
    p['g_out'] = (1.0 + 0.05 * jax.random.normal(keys[12], (1, E))).astype(jnp.float32)
    p['b_out'] = (0.05 * jax.random.normal(keys[13], (1, E))).astype(jnp.float32)
    return p


def reference(x, mask, p, num_heads):
    """Pure-JAX f32 reference mirroring the PyTorch forward."""
    B, S, E = x.shape
    H = num_heads
    d = E // H

    q = x @ p['wq'] + p['bq']
    k = x @ p['wk'] + p['bk']
    v = x @ p['wv'] + p['bv']
    qh = q.reshape(B, S, H, d).transpose(0, 2, 1, 3)
    kh = k.reshape(B, S, H, d).transpose(0, 2, 1, 3)
    vh = v.reshape(B, S, H, d).transpose(0, 2, 1, 3)
    sc = jnp.einsum('bhsd,bhtd->bhst', qh, kh) / jnp.sqrt(float(d)) + mask
    pw = jax.nn.softmax(sc, -1)
    ctx = jnp.einsum('bhst,bhtd->bhsd', pw, vh).transpose(0, 2, 1, 3).reshape(B, S, E)
    attn = ctx @ p['wo'] + p['bo']

    h1 = _layernorm(x + attn, p['g_in'], p['b_in'])
    m1 = jnp.maximum(h1 @ p['wm'] + p['bm'], 0.0)
    return _layernorm(m1, p['g_out'], p['b_out'])


if __name__ == "__main__":
    B, S, E, H = 2, 8, 32, 4   # batch, sequence_length, dim_embeddings, num_attention_heads

    key = jax.random.PRNGKey(0)
    kx, kp = jax.random.split(key)
    x = jax.random.normal(kx, (B, S, E), dtype=jnp.float32)

    # causal additive attn_mask [S, S]
    causal = jnp.tril(jnp.ones((S, S), dtype=bool))
    mask = jnp.where(causal, 0.0, -1e9).astype(jnp.float32)

    params = init_params(kp, E)

    out = run_layer(x, mask, params, H)
    out = jax.block_until_ready(out)

    ref = reference(x, mask, params, H)
    max_err = float(jnp.max(jnp.abs(out - ref)))
    # bf16 MXU operands (f32 accumulation) vs. f32 reference -> loosened tolerance.
    if bool(jnp.allclose(out, ref, atol=2e-2, rtol=2e-2)):
        print("KERNEL_OK")
    else:
        print("MISMATCH", max_err)
</pallas_src>

<mosaic_0001>
module attributes {stable_mosaic.version = 11 : i64} {
  func.func @simple_layer_kernel(%arg0: i32, %arg1: memref<1x8x33xf32, #tpu.memory_space<vmem>>, %arg2: memref<8x8xf32, #tpu.memory_space<vmem>>, %arg3: memref<12x33x8xbf16, #tpu.memory_space<vmem>>, %arg4: memref<4x8x32xbf16, #tpu.memory_space<vmem>>, %arg5: memref<32x32xbf16, #tpu.memory_space<vmem>>, %arg6: memref<8x32xf32, #tpu.memory_space<vmem>>, %arg7: memref<1x8x32xf32, #tpu.memory_space<vmem>>) attributes {dimension_semantics = [#tpu.dimension_semantics<parallel>], iteration_bounds = array<i64: 2>, scalar_prefetch = 0 : i64, scratch_operands = 0 : i64, tpu.core_type = #tpu.core_type<tc>, window_params = [{transform_indices = @transform_0, window_bounds = array<i64: 1, 8, 33>}, {pipeline_mode = #tpu.pipeline_mode<synchronous>, transform_indices = @transform_1, window_bounds = array<i64: 8, 8>}, {pipeline_mode = #tpu.pipeline_mode<synchronous>, transform_indices = @transform_2, window_bounds = array<i64: 12, 33, 8>}, {pipeline_mode = #tpu.pipeline_mode<synchronous>, transform_indices = @transform_3, window_bounds = array<i64: 4, 8, 32>}, {pipeline_mode = #tpu.pipeline_mode<synchronous>, transform_indices = @transform_4, window_bounds = array<i64: 32, 32>}, {pipeline_mode = #tpu.pipeline_mode<synchronous>, transform_indices = @transform_5, window_bounds = array<i64: 8, 32>}, {transform_indices = @transform_6, window_bounds = array<i64: 1, 8, 32>}]} {
    %c0 = arith.constant 0 : index
    %c0_0 = arith.constant 0 : index
    %c0_1 = arith.constant 0 : index
    %0 = vector.load %arg1[%c0, %c0_0, %c0_1] : memref<1x8x33xf32, #tpu.memory_space<vmem>>, vector<1x8x33xf32>
    %1 = vector.shape_cast %0 : vector<1x8x33xf32> to vector<8x33xf32>
    %2 = vector.extract_strided_slice %1 {offsets = [0, 0], sizes = [8, 32], strides = [1, 1]} : vector<8x33xf32> to vector<8x32xf32>
    %3 = arith.truncf %1 : vector<8x33xf32> to vector<8x33xbf16>
    %4 = vector.shape_cast %3 : vector<8x33xbf16> to vector<1x8x33xbf16>
    %5 = vector.broadcast %4 : vector<1x8x33xbf16> to vector<12x8x33xbf16>
    %c0_2 = arith.constant 0 : index
    %c0_3 = arith.constant 0 : index
    %c0_4 = arith.constant 0 : index
    %6 = vector.load %arg3[%c0_2, %c0_3, %c0_4] : memref<12x33x8xbf16, #tpu.memory_space<vmem>>, vector<12x33x8xbf16>
    "tpu.trace_start"() <{level = 10 : i32, message = "cse,ced->csd"}> : () -> ()
    %cst = arith.constant dense<0.000000e+00> : vector<12x8x8xf32>
    %7 = tpu.matmul %5, %6, %cst {dimension_numbers = #tpu.dot_dimension_numbers<[2], [1], [1], [2], [0, 0, 0, 1, 1, 2], [0], [0]>} : vector<12x8x33xbf16>, vector<12x33x8xbf16>, vector<12x8x8xf32> -> vector<12x8x8xf32>
    "tpu.trace_stop"() : () -> ()
    %8 = arith.truncf %7 : vector<12x8x8xf32> to vector<12x8x8xbf16>
    %9 = vector.extract_strided_slice %8 {offsets = [0, 0, 0], sizes = [4, 8, 8], strides = [1, 1, 1]} : vector<12x8x8xbf16> to vector<4x8x8xbf16>
    %10 = vector.extract_strided_slice %8 {offsets = [4, 0, 0], sizes = [4, 8, 8], strides = [1, 1, 1]} : vector<12x8x8xbf16> to vector<4x8x8xbf16>
    %11 = vector.extract_strided_slice %8 {offsets = [8, 0, 0], sizes = [4, 8, 8], strides = [1, 1, 1]} : vector<12x8x8xbf16> to vector<4x8x8xbf16>
    "tpu.trace_start"() <{level = 10 : i32, message = "hsd,htd->hst"}> : () -> ()
    %cst_5 = arith.constant dense<0.000000e+00> : vector<4x8x8xf32>
    %12 = tpu.matmul %9, %10, %cst_5 {dimension_numbers = #tpu.dot_dimension_numbers<[2], [2], [1], [1], [0, 0, 0, 1, 1, 1], [0], [0]>} : vector<4x8x8xbf16>, vector<4x8x8xbf16>, vector<4x8x8xf32> -> vector<4x8x8xf32>
    "tpu.trace_stop"() : () -> ()
    %c0_6 = arith.constant 0 : index
    %c0_7 = arith.constant 0 : index
    %13 = vector.load %arg2[%c0_6, %c0_7] : memref<8x8xf32, #tpu.memory_space<vmem>>, vector<8x8xf32>
    %14 = vector.shape_cast %13 : vector<8x8xf32> to vector<1x8x8xf32>
    %15 = vector.broadcast %14 : vector<1x8x8xf32> to vector<4x8x8xf32>
    %16 = arith.addf %12, %15 : vector<4x8x8xf32>
    %cst_8 = arith.constant dense<0xFF800000> : vector<4x8xf32>
    %17 = vector.multi_reduction <maximumf>, %16, %cst_8 [2] : vector<4x8x8xf32> to vector<4x8xf32>
    %18 = vector.shape_cast %17 : vector<4x8xf32> to vector<4x8x1xf32>
    %19 = vector.broadcast %18 : vector<4x8x1xf32> to vector<4x8x8xf32>
    %20 = arith.subf %16, %19 : vector<4x8x8xf32>
    %21 = math.exp %20 : vector<4x8x8xf32>
    %cst_9 = arith.constant dense<0.000000e+00> : vector<4x8xf32>
    %22 = vector.multi_reduction <add>, %21, %cst_9 [2] : vector<4x8x8xf32> to vector<4x8xf32>
    %23 = vector.shape_cast %22 : vector<4x8xf32> to vector<4x8x1xf32>
    %24 = vector.broadcast %23 : vector<4x8x1xf32> to vector<4x8x8xf32>
    %25 = arith.divf %21, %24 : vector<4x8x8xf32>
    %26 = arith.truncf %25 : vector<4x8x8xf32> to vector<4x8x8xbf16>
    "tpu.trace_start"() <{level = 10 : i32, message = "hst,htd->hsd"}> : () -> ()
    %cst_10 = arith.constant dense<0.000000e+00> : vector<4x8x8xf32>
    %27 = tpu.matmul %26, %11, %cst_10 {dimension_numbers = #tpu.dot_dimension_numbers<[2], [1], [1], [2], [0, 0, 0, 1, 1, 2], [0], [0]>} : vector<4x8x8xbf16>, vector<4x8x8xbf16>, vector<4x8x8xf32> -> vector<4x8x8xf32>
    "tpu.trace_stop"() : () -> ()
    %28 = arith.truncf %27 : vector<4x8x8xf32> to vector<4x8x8xbf16>
    %c0_11 = arith.constant 0 : index
    %c0_12 = arith.constant 0 : index
    %c0_13 = arith.constant 0 : index
    %29 = vector.load %arg4[%c0_11, %c0_12, %c0_13] : memref<4x8x32xbf16, #tpu.memory_space<vmem>>, vector<4x8x32xbf16>
    "tpu.trace_start"() <{level = 10 : i32, message = "hsd,hde->hse"}> : () -> ()
    %cst_14 = arith.constant dense<0.000000e+00> : vector<4x8x32xf32>
    %30 = tpu.matmul %28, %29, %cst_14 {dimension_numbers = #tpu.dot_dimension_numbers<[2], [1], [1], [2], [0, 0, 0, 1, 1, 2], [0], [0]>} : vector<4x8x8xbf16>, vector<4x8x32xbf16>, vector<4x8x32xf32> -> vector<4x8x32xf32>
    "tpu.trace_stop"() : () -> ()
    %cst_15 = arith.constant dense<0.000000e+00> : vector<8x32xf32>
    %31 = vector.multi_reduction <add>, %30, %cst_15 [0] : vector<4x8x32xf32> to vector<8x32xf32>
    %c0_16 = arith.constant 0 : index
    %c0_17 = arith.constant 0 : index
    %32 = vector.load %arg6[%c0_16, %c0_17] : memref<8x32xf32, #tpu.memory_space<vmem>>, vector<1x32xf32>
    %33 = vector.broadcast %32 : vector<1x32xf32> to vector<8x32xf32>
    %34 = arith.addf %31, %33 : vector<8x32xf32>
    %35 = arith.addf %2, %34 : vector<8x32xf32>
    %c2 = arith.constant 2 : index
    %c0_18 = arith.constant 0 : index
    %36 = vector.load %arg6[%c2, %c0_18] : memref<8x32xf32, #tpu.memory_space<vmem>>, vector<1x32xf32>
    %c3 = arith.constant 3 : index
    %c0_19 = arith.constant 0 : index
    %37 = vector.load %arg6[%c3, %c0_19] : memref<8x32xf32, #tpu.memory_space<vmem>>, vector<1x32xf32>
    %cst_20 = arith.constant dense<0.000000e+00> : vector<8xf32>
    %38 = vector.multi_reduction <add>, %35, %cst_20 [1] : vector<8x32xf32> to vector<8xf32>
    %39 = vector.shape_cast %38 : vector<8xf32> to vector<8x1xf32>
    %cst_21 = arith.constant 3.200000e+01 : f32
    %40 = vector.broadcast %cst_21 : f32 to vector<8x1xf32>
    %41 = arith.divf %39, %40 : vector<8x1xf32>
    %42 = vector.broadcast %41 : vector<8x1xf32> to vector<8x32xf32>
    %43 = arith.subf %35, %42 : vector<8x32xf32>
    %44 = arith.mulf %43, %43 : vector<8x32xf32>
    %cst_22 = arith.constant dense<0.000000e+00> : vector<8xf32>
    %45 = vector.multi_reduction <add>, %44, %cst_22 [1] : vector<8x32xf32> to vector<8xf32>
    %46 = vector.shape_cast %45 : vector<8xf32> to vector<8x1xf32>
    %cst_23 = arith.constant 3.200000e+01 : f32
    %47 = vector.broadcast %cst_23 : f32 to vector<8x1xf32>
    %48 = arith.divf %46, %47 : vector<8x1xf32>
    %cst_24 = arith.constant 9.99999974E-6 : f32
    %49 = vector.broadcast %cst_24 : f32 to vector<8x1xf32>
    %50 = arith.addf %48, %49 : vector<8x1xf32>
    %51 = math.rsqrt %50 : vector<8x1xf32>
    %52 = vector.broadcast %51 : vector<8x1xf32> to vector<8x32xf32>
    %53 = arith.mulf %43, %52 : vector<8x32xf32>
    %54 = vector.broadcast %36 : vector<1x32xf32> to vector<8x32xf32>
    %55 = arith.mulf %53, %54 : vector<8x32xf32>
    %56 = vector.broadcast %37 : vector<1x32xf32> to vector<8x32xf32>
    %57 = arith.addf %55, %56 : vector<8x32xf32>
    %58 = arith.truncf %57 : vector<8x32xf32> to vector<8x32xbf16>
    %c0_25 = arith.constant 0 : index
    %c0_26 = arith.constant 0 : index
    %59 = vector.load %arg5[%c0_25, %c0_26] : memref<32x32xbf16, #tpu.memory_space<vmem>>, vector<32x32xbf16>
    %cst_27 = arith.constant dense<0.000000e+00> : vector<8x32xf32>
    %60 = tpu.matmul %58, %59, %cst_27 {dimension_numbers = #tpu.dot_dimension_numbers<[1], [0], [0], [1], [0, 0, 1, 1], [], []>} : vector<8x32xbf16>, vector<32x32xbf16>, vector<8x32xf32> -> vector<8x32xf32>
    %c1 = arith.constant 1 : index
    %c0_28 = arith.constant 0 : index
    %61 = vector.load %arg6[%c1, %c0_28] : memref<8x32xf32, #tpu.memory_space<vmem>>, vector<1x32xf32>
    %62 = vector.broadcast %61 : vector<1x32xf32> to vector<8x32xf32>
    %63 = arith.addf %60, %62 : vector<8x32xf32>
    %cst_29 = arith.constant 0.000000e+00 : f32
    %64 = vector.broadcast %cst_29 : f32 to vector<8x32xf32>
    %65 = arith.maximumf %63, %64 : vector<8x32xf32>
    %c4 = arith.constant 4 : index
    %c0_30 = arith.constant 0 : index
    %66 = vector.load %arg6[%c4, %c0_30] : memref<8x32xf32, #tpu.memory_space<vmem>>, vector<1x32xf32>
    %c5 = arith.constant 5 : index
    %c0_31 = arith.constant 0 : index
    %67 = vector.load %arg6[%c5, %c0_31] : memref<8x32xf32, #tpu.memory_space<vmem>>, vector<1x32xf32>
    %cst_32 = arith.constant dense<0.000000e+00> : vector<8xf32>
    %68 = vector.multi_reduction <add>, %65, %cst_32 [1] : vector<8x32xf32> to vector<8xf32>
    %69 = vector.shape_cast %68 : vector<8xf32> to vector<8x1xf32>
    %cst_33 = arith.constant 3.200000e+01 : f32
    %70 = vector.broadcast %cst_33 : f32 to vector<8x1xf32>
    %71 = arith.divf %69, %70 : vector<8x1xf32>
    %72 = vector.broadcast %71 : vector<8x1xf32> to vector<8x32xf32>
    %73 = arith.subf %65, %72 : vector<8x32xf32>
    %74 = arith.mulf %73, %73 : vector<8x32xf32>
    %cst_34 = arith.constant dense<0.000000e+00> : vector<8xf32>
    %75 = vector.multi_reduction <add>, %74, %cst_34 [1] : vector<8x32xf32> to vector<8xf32>
    %76 = vector.shape_cast %75 : vector<8xf32> to vector<8x1xf32>
    %cst_35 = arith.constant 3.200000e+01 : f32
    %77 = vector.broadcast %cst_35 : f32 to vector<8x1xf32>
    %78 = arith.divf %76, %77 : vector<8x1xf32>
    %cst_36 = arith.constant 9.99999974E-6 : f32
    %79 = vector.broadcast %cst_36 : f32 to vector<8x1xf32>
    %80 = arith.addf %78, %79 : vector<8x1xf32>
    %81 = math.rsqrt %80 : vector<8x1xf32>
    %82 = vector.broadcast %81 : vector<8x1xf32> to vector<8x32xf32>
    %83 = arith.mulf %73, %82 : vector<8x32xf32>
    %84 = vector.broadcast %66 : vector<1x32xf32> to vector<8x32xf32>
    %85 = arith.mulf %83, %84 : vector<8x32xf32>
    %86 = vector.broadcast %67 : vector<1x32xf32> to vector<8x32xf32>
    %87 = arith.addf %85, %86 : vector<8x32xf32>
    %c0_37 = arith.constant 0 : index
    %c0_38 = arith.constant 0 : index
    %c0_39 = arith.constant 0 : index
    %88 = vector.load %arg7[%c0_37, %c0_38, %c0_39] : memref<1x8x32xf32, #tpu.memory_space<vmem>>, vector<1x8x32xf32>
    %89 = vector.shape_cast %88 : vector<1x8x32xf32> to vector<8x32xf32>
    %90 = vector.shape_cast %87 : vector<8x32xf32> to vector<1x8x32xf32>
    tpu.vector_store %arg7[%c0_37, %c0_38, %c0_39], %90 {strides = array<i32>} : memref<1x8x32xf32, #tpu.memory_space<vmem>>, vector<1x8x32xf32>,
    return
  }
  func.func @transform_0(%arg0: i32) -> (i32, i32, i32) {
    %c0_i32 = arith.constant 0 : i32
    %c0_i32_0 = arith.constant 0 : i32
    %c0_i32_1 = arith.constant 0 : i32
    return %arg0, %c0_i32, %c0_i32_0 : i32, i32, i32
  }
  func.func @transform_1(%arg0: i32) -> (i32, i32) {
    %c0_i32 = arith.constant 0 : i32
    %c0_i32_0 = arith.constant 0 : i32
    %c0_i32_1 = arith.constant 0 : i32
    return %c0_i32, %c0_i32_0 : i32, i32
  }
  func.func @transform_2(%arg0: i32) -> (i32, i32, i32) {
    %c0_i32 = arith.constant 0 : i32
    %c0_i32_0 = arith.constant 0 : i32
    %c0_i32_1 = arith.constant 0 : i32
    %c0_i32_2 = arith.constant 0 : i32
    return %c0_i32, %c0_i32_0, %c0_i32_1 : i32, i32, i32
  }
  func.func @transform_3(%arg0: i32) -> (i32, i32, i32) {
    %c0_i32 = arith.constant 0 : i32
    %c0_i32_0 = arith.constant 0 : i32
    %c0_i32_1 = arith.constant 0 : i32
    %c0_i32_2 = arith.constant 0 : i32
    return %c0_i32, %c0_i32_0, %c0_i32_1 : i32, i32, i32
  }
  func.func @transform_4(%arg0: i32) -> (i32, i32) {
    %c0_i32 = arith.constant 0 : i32
    %c0_i32_0 = arith.constant 0 : i32
    %c0_i32_1 = arith.constant 0 : i32
    return %c0_i32, %c0_i32_0 : i32, i32
  }
  func.func @transform_5(%arg0: i32) -> (i32, i32) {
    %c0_i32 = arith.constant 0 : i32
    %c0_i32_0 = arith.constant 0 : i32
    %c0_i32_1 = arith.constant 0 : i32
    return %c0_i32, %c0_i32_0 : i32, i32
  }
  func.func @transform_6(%arg0: i32) -> (i32, i32, i32) {
    %c0_i32 = arith.constant 0 : i32
    %c0_i32_0 = arith.constant 0 : i32
    %c0_i32_1 = arith.constant 0 : i32
    return %arg0, %c0_i32, %c0_i32_0 : i32, i32, i32
  }
}

</mosaic_0001>

<bundles_post_ra>
// kernel: tpu_custom_call.1
= control target key start
LH: loop header
LB: loop body
LE: loop exit
PB: predicated region body
PF: predicated region fallthrough
CT: control target
= control target key end

     0   :  { %11 = vsyncpa [#allocation3], 0  ;;  %s2841_s0 = inlined_call_operand.vmem [shape: f32[2,8,33], index: 0, kind: input, shape index: {}]   ;;  %s2842_s1 = inlined_call_operand.vmem [shape: f32[8,8], index: 1, kind: input, shape index: {}]   ;;  %s2843_s2 = inlined_call_operand.vmem [shape: bf16[12,33,8], index: 2, kind: input, shape index: {}]   ;;  %s2844_s3 = inlined_call_operand.vmem [shape: bf16[4,8,32], index: 3, kind: input, shape index: {}]   ;;  %s2845_s4 = inlined_call_operand.vmem [shape: bf16[32,32], index: 4, kind: input, shape index: {}]   ;;  %s2846_s5 = inlined_call_operand.vmem [shape: f32[8,32], index: 5, kind: input, shape index: {}]   ;;  %s2847_s6 = inlined_call_operand.hbm [shape: f32[2,8,32], index: 6, kind: output, shape index: {}]  }
   0x1   :  { %13 = vsyncpa [#allocation3 + $0x1], 0  ;;  %s2399_s21 = smov 0   ;;  %s2401_s22 = smov 0  }
   0x2   :  { %s2403_s23 = smov 0   ;;  %s2405_s24 = smov 0  }
   0x3 LB: > { %s2420_s25 = sadd.s32 4294967295, %s2358_s24   ;;  %s1842_s26 = sadd.s32 4294967294, %s2358_s24   ;;  %s2358_s24 = sphi %s2405_s24, %s2853_s24   ;;  %s2354_s23 = sphi %s2403_s23, %s2852_s23   ;;  %s2350_s22 = sphi %s2401_s22, %s2851_s22   ;;  %s2346_s21 = sphi %s2399_s21, %s2850_s21  }
   0x4   : > { %s2424_s27 = sadd.s32 1, %s2358_s24   ;;  %s157_s28 = sadd.s32 1, %s2354_s23 }
   0x5   : > { %s154_s29 = ssub.s32 %s2358_s24, %s2424_s27  ;;  %p167_p0 = scmp.ne.s32.totalorder %s2354_s23, %s2350_s22 }
   0x6   : > { %p155_p1 = scmp.eq.s32.totalorder %s154_s29, 0  ;;  %p168_p2 = scmp.eq.s32.totalorder %s2420_s25, 1 }
   0x7   : > { %p173_p3 = scmp.ne.s32.totalorder %s2350_s22, %s2346_s21  ;;  %p174_p4 = scmp.eq.s32.totalorder %s1842_s26, 1 }
   0x8   : > { %s2435_s30 = scalar_select %p155_p1, %s2354_s23, %s157_s28  }
   0x9   : > { %p2437_p5 = por %p168_p2, %p167_p0  ;;  %p2441_p6 = por %p174_p4, %p173_p3 }
   0xa   : > { %p1845_p7 = scmp.ge.s32.totalorder %s2358_s24, 1  ;;  %p214_p8 = scmp.lt.s32.totalorder %s2358_s24, 3 }
   0xc   : > { %p215_p9 = pnand %p1845_p7, %p214_p8 }
   0xd   : > { %v2238_v0 = vld [vmem:[%s2843_s2] sm:$0xff] (!%p215_p9)   ;;  %v2360_v1 = vmov (!%p215_p9), 0.0   ;;  %v2239_v2 = vld [vmem:[%s2843_s2 + $0x14] sm:$0xff] (!%p215_p9)   ;;  %vm329_vm0 = vcmask (!%p215_p9), 1040384   ;;  %v2240_v3 = vld [vmem:[%s2843_s2 + $0x8] sm:$0xff] (!%p215_p9)   ;;  %v2361_v5 = vmov (!%p215_p9), 0  }
   0xe   : > { %218 = sbr.rel (%p215_p9) target bundleno = 2111 (0x83f), region = 44  ;;  %1996 = vmatprep.subr.bf16.mxu0 (!%p215_p9), %v2360_v1  ;;  %2006 = vmatprep.subr.bf16.mxu1 (!%p215_p9), %v2360_v1  ;;  %v2241_v4 = vld [vmem:[%s2843_s2 + $0x1c] sm:$0xff] (!%p215_p9)   ;;  %v2462_v6 = vsel (!%p215_p9), %vm329_vm0, 65535, %v2361_v5  ;;  %v2242_v7 = vld [vmem:[%s2843_s2 + $0x10] ss:$0 sps:$4 sm:$0x11] (!%p215_p9)  }
   0xf   : > { %1997 = vmatpush3.bf16.msra.mxu0 (!%p215_p9), %v2238_v0  ;;  %2007 = vmatpush3.bf16.msra.mxu1 (!%p215_p9), %v2239_v2  ;;  %v2243_v8 = vld [vmem:[%s2843_s2 + $0x24] ss:$0 sps:$4 sm:$0x11] (!%p215_p9)   ;;  %vm2362_vm1 = vmmov (!%p215_p9), 0   ;;  %p243_p10 = scmp.lt.s32.totalorder (!%p215_p9), %s2420_s25, 1  ;;  %v333_v9 = vand.u32 (!%p215_p9), %v2242_v7, %v2462_v6  ;;  %v2244_v11 = vld [vmem:[%s2843_s2 + $0x28] sm:$0xff] (!%p215_p9)  }
  0x10   : > { %1998 = vmatprep.subr.bf16.mxu0 (!%p215_p9), %v2360_v1  ;;  %2008 = vmatprep.subr.bf16.mxu1 (!%p215_p9), %v2360_v1  ;;  %v391_v10 = vand.u32 (!%p215_p9), %v2243_v8, %v2462_v6  ;;  %vm325_vm2 = vcmask (!%p215_p9), 269312   ;;  %v2245_v13 = vld [vmem:[%s2843_s2 + $0x3c] sm:$0xff] (!%p215_p9)   ;;  %v2248_v15 = vld [vmem:[%s2843_s2 + $0x38] ss:$0 sps:$4 sm:$0x11] (!%p215_p9)   ;;  %v2246_v17 = vld [vmem:[%s2843_s2 + $0x30] sm:$0xff] (!%p215_p9)  }
  0x11   : > { %2002 = vmatprep.mubr.msk.bf16.mxu0 (!%p215_p9), %vm2362_vm1, %v2360_v1  ;;  %2012 = vmatprep.mubr.msk.bf16.mxu1 (!%p215_p9), %vm2362_vm1, %v2360_v1  ;;  %v2249_v16 = vld [vmem:[%s2843_s2 + $0x4c] ss:$0 sps:$4 sm:$0x11] (!%p215_p9)   ;;  %v2247_v18 = vld [vmem:[%s2843_s2 + $0x44] sm:$0xff] (!%p215_p9)   ;;  %v449_v19 = vand.u32 (!%p215_p9), %v2248_v15, %v2462_v6  ;;  %v2250_v21 = vld [vmem:[%s2843_s2 + $0x50] sm:$0xff] (!%p215_p9)   ;;  %vm1026_vm3 = vcmask (!%p215_p9), 64512  }
  0x12   : > { %v507_v20 = vand.u32 (!%p215_p9), %v2249_v16, %v2462_v6  ;;  %v2251_v22 = vld [vmem:[%s2843_s2 + $0x64] sm:$0xff] (!%p215_p9)   ;;  %v2252_v23 = vld [vmem:[%s2843_s2 + $0x58] sm:$0xff] (!%p215_p9)   ;;  %v2253_v24 = vld [vmem:[%s2843_s2 + $0x6c] sm:$0xff] (!%p215_p9)   ;;  %vm1262_vm4 = vcmask (!%p215_p9), 1043456   ;;  %vm1636_vm5 = vcmask (!%p215_p9), 261120   ;;  %s240_s18 = sand.u32 (!%p215_p9), 1, %s2350_s22  }
  0x13   : > { %1999 = vmatpush3.bf16.msra.mxu0 (!%p215_p9), %v2240_v3  ;;  %2009 = vmatpush3.bf16.msra.mxu1 (!%p215_p9), %v2241_v4  ;;  %v2254_v25 = vld [vmem:[%s2843_s2 + $0x60] ss:$0 sps:$4 sm:$0x11] (!%p215_p9)   ;;  %v2255_v26 = vld [vmem:[%s2843_s2 + $0x74] ss:$0 sps:$4 sm:$0x11] (!%p215_p9)  }
  0x14   : > { %2000 = vmatprep.subr.bf16.mxu0 (!%p215_p9), %v2360_v1  ;;  %2010 = vmatprep.subr.bf16.mxu1 (!%p215_p9), %v2360_v1  ;;  %v565_v27 = vand.u32 (!%p215_p9), %v2254_v25, %v2462_v6  ;;  %v623_v28 = vand.u32 (!%p215_p9), %v2255_v26, %v2462_v6  ;;  %v2256_v29 = vld [vmem:[%s2843_s2 + $0x78] sm:$0xff] (!%p215_p9)   ;;  %v2257_v30 = vld [vmem:[%s2843_s2 + $0x8c] sm:$0xff] (!%p215_p9)   ;;  %v2258_v31 = vld [vmem:[%s2843_s2 + $0x80] sm:$0xff] (!%p215_p9)   ;;  %s1846_s19 = sshll.u32 (!%p215_p9), %s240_s18, 3  ;;  %s1918_s9 = sshll.u32 (!%p215_p9), %s2420_s25, 7 }
  0x15   : > { %s244_s26 = scalar_select %p243_p10, %s2420_s25, 1  ;;  %v2259_v32 = vld [vmem:[%s2843_s2 + $0x94] sm:$0xff]   ;;  %v2260_v33 = vld [vmem:[%s2843_s2 + $0x88] ss:$0 sps:$4 sm:$0x11]   ;;  %v2262_v37 = vld [vmem:[%s2843_s2 + $0xa0] sm:$0xff]  }
  0x16   : > { %v2261_v34 = vld [vmem:[%s2843_s2 + $0x9c] ss:$0 sps:$4 sm:$0x11]   ;;  %v681_v35 = vand.u32 %v2260_v33, %v2462_v6  ;;  %v2263_v38 = vld [vmem:[%s2843_s2 + $0xb4] sm:$0xff]   ;;  %v2264_v39 = vld [vmem:[%s2843_s2 + $0xa8] sm:$0xff]   ;;  %s2798_s14 = scalar_lea.hbm %s2847_s6, %s1918_s9  ;;  %s1770_s15 = scalar_lea.sflag [#allocation3], %s240_s18 }
  0x17   : > { %s1847_s28 = sshll.u32 %s244_s26, 3  ;;  %2001 = vmatpush3.bf16.msra.mxu0 %v333_v9  ;;  %2011 = vmatpush3.bf16.msra.mxu1 %v391_v10  ;;  %v739_v36 = vand.u32 %v2261_v34, %v2462_v6  ;;  %v2265_v40 = vld [vmem:[%s2843_s2 + $0xbc] sm:$0xff]   ;;  %v2266_v41 = vld [vmem:[%s2843_s2 + $0xb0] ss:$0 sps:$4 sm:$0x11]   ;;  %v2268_v45 = vld [vmem:[%s2843_s2 + $0xc8] sm:$0xff]  }
  0x18   : > { %s246_s10 = scalar_lea.vmem %s2841_s0, %s1847_s28  ;;  %2016 = vmatprep.subr.bf16.mxu0 %v2360_v1  ;;  %2026 = vmatprep.subr.bf16.mxu1 %v2360_v1  ;;  %v2267_v42 = vld [vmem:[%s2843_s2 + $0xc4] ss:$0 sps:$4 sm:$0x11]   ;;  %v797_v43 = vand.u32 %v2266_v41, %v2462_v6  ;;  %v2269_v46 = vld [vmem:[%s2843_s2 + $0xdc] sm:$0xff]   ;;  %v2270_v47 = vld [vmem:[%s2843_s2 + $0xd0] sm:$0xff]   ;;  %s2363_s25 = smov [#allocation2]  }
  0x19   : > { %v2487_v12 = vld [vmem:[%s246_s10] sm:$0xff]  ;;  %v855_v44 = vand.u32 %v2267_v42, %v2462_v6  ;;  %v2272_v49 = vld [vmem:[%s2843_s2 + $0xd8] ss:$0 sps:$4 sm:$0x11]   ;;  %s242_s10 = scalar_lea.vmem [#allocation2], %s1846_s19  ;;  %s2300_s17 = sshll.u32 %s2363_s25, 4  ;;  %s2301_s17 = int_to_ptr.vmem [resolvable:$false] %s2300_s17 }
  0x1a   : > { %v2495_v14 = vpack.c.bf16 %v2487_v12, %v2487_v12  ;;  %v2271_v48 = vld [vmem:[%s2843_s2 + $0xe4] sm:$0xff]   ;;  %v2273_v50 = vld [vmem:[%s2843_s2 + $0xec] ss:$0 sps:$4 sm:$0x11]   ;;  %v913_v51 = vand.u32 %v2272_v49, %v2462_v6  ;;  %s1783_s11 = sshll.u32 %s242_s10, 4  ;;  %s2302_s19 = scalar_lea.vmem %s2301_s17, 256  ;;  %s2800_s11 = int_to_ptr.vmem [resolvable:$true] %s1783_s11 }
  0x1b   : > { %v971_v52 = vand.u32 %v2273_v50, %v2462_v6  ;;  %s2296_s16 = scalar_lea.vmem %s2800_s11, 128  ;;  %p2303_p0 = scmp.lt.s32.totalorder %s2800_s11, %s2301_s17 }
  0x1c   : > { %2003 = vmatmul.mubr.msk.bf16.vlgmr.msra.gmra.mrb[0].mxu0 %vm325_vm2, %v2495_v14  ;;  %2013 = vmatmul.mubr.msk.bf16.vlgmr.msra.gmra.mrb[0].mxu1 %vm325_vm2, %v2495_v14  ;;  %p2297_p11 = scmp.ne.s32.totalorder %s2800_s11, %s2296_s16  ;;  %p2304_p1 = scmp.lt.s32.totalorder %s2302_s19, %s2296_s16 }
  0x1d   : > { %2017 = vmatpush3.bf16.msra.mxu0 %v2244_v11  ;;  %2027 = vmatpush3.bf16.msra.mxu1 %v2245_v13 }
  0x1e   : > { %2018 = vmatprep.subr.bf16.mxu0 %v2360_v1  ;;  %2028 = vmatprep.subr.bf16.mxu1 %v2360_v1  ;;  %p2298_p12 = pnand %p2297_p11, %p2437_p5  ;;  %p2305_p2 = por %p2304_p1, %p2303_p0 }
  0x1f   : > { %2022 = vmatprep.mubr.msk.bf16.mxu0 %vm2362_vm1, %v2360_v1  ;;  %2032 = vmatprep.mubr.msk.bf16.mxu1 %vm2362_vm1, %v2360_v1 }
  0x20   : > { %p2299_p13 = pneg %p2298_p12 }
  0x21   : > { %2019 = vmatpush3.bf16.msra.mxu0 %v2246_v17  ;;  %2029 = vmatpush3.bf16.msra.mxu1 %v2247_v18 }
  0x22   : > { %2020 = vmatprep.subr.bf16.mxu0 %v2360_v1  ;;  %2030 = vmatprep.subr.bf16.mxu1 %v2360_v1  ;;  %p2306_p3 = pnand %p2305_p2, %p2299_p13 }
  0x25   : > { %2021 = vmatpush3.bf16.msra.mxu0 %v449_v19  ;;  %2031 = vmatpush3.bf16.msra.mxu1 %v507_v20 }
  0x26   : > { %2036 = vmatprep.subr.bf16.mxu0 %v2360_v1  ;;  %2046 = vmatprep.subr.bf16.mxu1 %v2360_v1 }
  0x28   : > { %2023 = vmatmul.mubr.msk.bf16.vlgmr.msra.gmra.mrb[4].mxu0 %vm325_vm2, %v2495_v14  ;;  %2033 = vmatmul.mubr.msk.bf16.vlgmr.msra.gmra.mrb[4].mxu1 %vm325_vm2, %v2495_v14 }
  0x29   : > { %2037 = vmatpush3.bf16.msra.mxu0 %v2250_v21  ;;  %2047 = vmatpush3.bf16.msra.mxu1 %v2251_v22 }
  0x2a   : > { %2038 = vmatprep.subr.bf16.mxu0 %v2360_v1  ;;  %2048 = vmatprep.subr.bf16.mxu1 %v2360_v1 }
  0x2b   : > { %2042 = vmatprep.mubr.msk.bf16.mxu0 %vm2362_vm1, %v2360_v1  ;;  %2052 = vmatprep.mubr.msk.bf16.mxu1 %vm2362_vm1, %v2360_v1 }
  0x2d   : > { %2039 = vmatpush3.bf16.msra.mxu0 %v2252_v23  ;;  %2049 = vmatpush3.bf16.msra.mxu1 %v2253_v24 }
  0x2e   : > { %2040 = vmatprep.subr.bf16.mxu0 %v2360_v1  ;;  %2050 = vmatprep.subr.bf16.mxu1 %v2360_v1 }
  0x31   : > { %2041 = vmatpush3.bf16.msra.mxu0 %v565_v27  ;;  %2051 = vmatpush3.bf16.msra.mxu1 %v623_v28 }
  0x32   : > { %2056 = vmatprep.subr.bf16.mxu0 %v2360_v1  ;;  %2066 = vmatprep.subr.bf16.mxu1 %v2360_v1 }
  0x34   : > { %2043 = vmatmul.mubr.msk.bf16.vlgmr.msra.gmra.mrb[8].mxu0 %vm325_vm2, %v2495_v14  ;;  %2053 = vmatmul.mubr.msk.bf16.vlgmr.msra.gmra.mrb[8].mxu1 %vm325_vm2, %v2495_v14 }
  0x35   : > { %2057 = vmatpush3.bf16.msra.mxu0 %v2256_v29  ;;  %2067 = vmatpush3.bf16.msra.mxu1 %v2257_v30 }
  0x36   : > { %2058 = vmatprep.subr.bf16.mxu0 %v2360_v1  ;;  %2068 = vmatprep.subr.bf16.mxu1 %v2360_v1 }
  0x37   : > { %2062 = vmatprep.mubr.msk.bf16.mxu0 %vm2362_vm1, %v2360_v1  ;;  %2072 = vmatprep.mubr.msk.bf16.mxu1 %vm2362_vm1, %v2360_v1 }
  0x39   : > { %2059 = vmatpush3.bf16.msra.mxu0 %v2258_v31  ;;  %2069 = vmatpush3.bf16.msra.mxu1 %v2259_v32 }
  0x3a   : > { %2060 = vmatprep.subr.bf16.mxu0 %v2360_v1  ;;  %2070 = vmatprep.subr.bf16.mxu1 %v2360_v1 }
  0x3d   : > { %2061 = vmatpush3.bf16.msra.mxu0 %v681_v35  ;;  %2071 = vmatpush3.bf16.msra.mxu1 %v739_v36 }
  0x3e   : > { %2076 = vmatprep.subr.bf16.mxu0 %v2360_v1  ;;  %2086 = vmatprep.subr.bf16.mxu1 %v2360_v1 }
  0x40   : > { %2063 = vmatmul.mubr.msk.bf16.vlgmr.msra.gmra.mrb[12].mxu0 %vm325_vm2, %v2495_v14  ;;  %2073 = vmatmul.mubr.msk.bf16.vlgmr.msra.gmra.mrb[12].mxu1 %vm325_vm2, %v2495_v14 }
  0x41   : > { %2077 = vmatpush3.bf16.msra.mxu0 %v2262_v37  ;;  %2087 = vmatpush3.bf16.msra.mxu1 %v2263_v38 }
  0x42   : > { %2078 = vmatprep.subr.bf16.mxu0 %v2360_v1  ;;  %2088 = vmatprep.subr.bf16.mxu1 %v2360_v1 }
  0x43   : > { %2082 = vmatprep.mubr.msk.bf16.mxu0 %vm2362_vm1, %v2360_v1  ;;  %2092 = vmatprep.mubr.msk.bf16.mxu1 %vm2362_vm1, %v2360_v1 }
  0x45   : > { %2079 = vmatpush3.bf16.msra.mxu0 %v2264_v39  ;;  %2089 = vmatpush3.bf16.msra.mxu1 %v2265_v40 }
  0x46   : > { %2080 = vmatprep.subr.bf16.mxu0 %v2360_v1  ;;  %2090 = vmatprep.subr.bf16.mxu1 %v2360_v1 }
  0x49   : > { %2081 = vmatpush3.bf16.msra.mxu0 %v797_v43  ;;  %2091 = vmatpush3.bf16.msra.mxu1 %v855_v44 }
  0x4a   : > { %2096 = vmatprep.subr.bf16.mxu0 %v2360_v1  ;;  %2106 = vmatprep.subr.bf16.mxu1 %v2360_v1 }
  0x4c   : > { %2083 = vmatmul.mubr.msk.bf16.vlgmr.msra.gmra.mrb[16].mxu0 %vm325_vm2, %v2495_v14  ;;  %2093 = vmatmul.mubr.msk.bf16.vlgmr.msra.gmra.mrb[16].mxu1 %vm325_vm2, %v2495_v14 }
  0x4d   : > { %2097 = vmatpush3.bf16.msra.mxu0 %v2268_v45  ;;  %2107 = vmatpush3.bf16.msra.mxu1 %v2269_v46 }
  0x4e   : > { %2098 = vmatprep.subr.bf16.mxu0 %v2360_v1  ;;  %2108 = vmatprep.subr.bf16.mxu1 %v2360_v1 }
  0x4f   : > { %2102 = vmatprep.mubr.msk.bf16.mxu0 %vm2362_vm1, %v2360_v1  ;;  %2112 = vmatprep.mubr.msk.bf16.mxu1 %vm2362_vm1, %v2360_v1 }
  0x51   : > { %2099 = vmatpush3.bf16.msra.mxu0 %v2270_v47  ;;  %2109 = vmatpush3.bf16.msra.mxu1 %v2271_v48 }
  0x52   : > { %2100 = vmatprep.subr.bf16.mxu0 %v2360_v1  ;;  %2110 = vmatprep.subr.bf16.mxu1 %v2360_v1 }
  0x55   : > { %2101 = vmatpush3.bf16.msra.mxu0 %v913_v51  ;;  %2111 = vmatpush3.bf16.msra.mxu1 %v971_v52 }
  0x56   : > { %2116 = vmatprep.subr.bf16.mxu0 %v2360_v1  ;;  %2122 = vmatprep.subr.bf16.mxu1 %v2360_v1 }
  0x58   : > { %2103 = vmatmul.mubr.msk.bf16.vlgmr.msra.gmra.mrb[20].mxu0 %vm325_vm2, %v2495_v14  ;;  %2113 = vmatmul.mubr.msk.bf16.vlgmr.msra.gmra.mrb[20].mxu1 %vm325_vm2, %v2495_v14 }
  0x59   : > { %2118 = vmatprep.mubr.msk.bf16.mxu0 %vm2362_vm1, %v2360_v1  ;;  %2124 = vmatprep.mubr.msk.bf16.mxu1 %vm2362_vm1, %v2360_v1 }
  0xef   : > { %v369_v53 = vpop.f32.mrb[0].mxu0  ;;  %v427_v54 = vpop.f32.mrb[0].mxu1 }
  0xf0   : > { %v2004_v55 = vpop.f32.mrb[1].mxu0  ;;  %v2014_v56 = vpop.f32.mrb[1].mxu1  ;;  %v1013_v19 = vpack.c.bf16 %v369_v53, %v369_v53  ;;  %v1014_v20 = vpack.c.bf16 %v427_v54, %v427_v54 }
  0xf1   : > { %v372_v57 = vpop.f32.mrb[2].mxu0  ;;  %v430_v58 = vpop.f32.mrb[2].mxu1  ;;  %v1025_v55 = vld [vmem:[%s2842_s1] sm:$0xff] }
  0xf2   : > { %v2005_v59 = vpop.f32.mrb[3].mxu0  ;;  %v2015_v60 = vpop.f32.mrb[3].mxu1 }
  0xfb   : > { %v485_v61 = vpop.f32.mrb[4].mxu0  ;;  %v543_v62 = vpop.f32.mrb[4].mxu1 }
  0xfc   : > { %v2024_v63 = vpop.f32.mrb[5].mxu0  ;;  %v2034_v0 = vpop.f32.mrb[5].mxu1  ;;  %v1015_v33 = vpack.c.bf16 %v485_v61, %v485_v61  ;;  %v1016_v34 = vpack.c.bf16 %v543_v62, %v543_v62 }
  0xfd   : > { %v488_v2 = vpop.f32.mrb[6].mxu0  ;;  %v546_v3 = vpop.f32.mrb[6].mxu1 }
  0xfe   : > { %v2025_v4 = vpop.f32.mrb[7].mxu0  ;;  %v2035_v5 = vpop.f32.mrb[7].mxu1 }
 0x107   : > { %v601_v6 = vpop.f32.mrb[8].mxu0  ;;  %v659_v7 = vpop.f32.mrb[8].mxu1 }
 0x108   : > { %v1017_v8 = vpack.c.bf16 %v601_v6, %v601_v6  ;;  %v1018_v9 = vpack.c.bf16 %v659_v7, %v659_v7  ;;  %v2044_v10 = vpop.f32.mrb[9].mxu0  ;;  %v2054_v11 = vpop.f32.mrb[9].mxu1 }
 0x109   : > { %v604_v13 = vpop.f32.mrb[10].mxu0  ;;  %v662_v14 = vpop.f32.mrb[10].mxu1 }
 0x10a   : > { %v1031_v15 = vsel %vm1026_vm3, %v1017_v8, 0  ;;  %v1077_v16 = vsel %vm1026_vm3, %v1018_v9, 0  ;;  %v2045_v17 = vpop.f32.mrb[11].mxu0  ;;  %v2055_v18 = vpop.f32.mrb[11].mxu1 }
 0x10b   : > { %2117 = vmatpush3.bf16.xpose.msra.mxu0 %v1031_v15  ;;  %2123 = vmatpush3.bf16.xpose.msra.mxu1 %v1077_v16 }
 0x10c   : > { %2128 = vmatprep.subr.bf16.mxu0 %v2360_v1  ;;  %2134 = vmatprep.subr.bf16.mxu1 %v2360_v1 }
 0x112   : > { %2119 = vmatmul.mubr.msk.bf16.vlgmr.msra.gmra.mrb[24].mxu0 %vm1026_vm3, %v1013_v19  ;;  %2125 = vmatmul.mubr.msk.bf16.vlgmr.msra.gmra.mrb[24].mxu1 %vm1026_vm3, %v1014_v20 }
 0x113   : > { %v717_v21 = vpop.f32.mrb[12].mxu0  ;;  %v775_v22 = vpop.f32.mrb[12].mxu1  ;;  %2130 = vmatprep.mubr.msk.bf16.mxu0 %vm2362_vm1, %v2360_v1  ;;  %2136 = vmatprep.mubr.msk.bf16.mxu1 %vm2362_vm1, %v2360_v1 }
 0x114   : > { %v1019_v23 = vpack.c.bf16 %v717_v21, %v717_v21  ;;  %v1020_v24 = vpack.c.bf16 %v775_v22, %v775_v22  ;;  %v2064_v25 = vpop.f32.mrb[13].mxu0  ;;  %v2074_v26 = vpop.f32.mrb[13].mxu1 }
 0x115   : > { %v720_v27 = vpop.f32.mrb[14].mxu0  ;;  %v778_v28 = vpop.f32.mrb[14].mxu1 }
 0x116   : > { %v1123_v29 = vsel %vm1026_vm3, %v1019_v23, 0  ;;  %v1169_v30 = vsel %vm1026_vm3, %v1020_v24, 0  ;;  %v2065_v31 = vpop.f32.mrb[15].mxu0  ;;  %v2075_v32 = vpop.f32.mrb[15].mxu1 }
 0x117   : > { %2129 = vmatpush3.bf16.xpose.msra.mxu0 %v1123_v29  ;;  %2135 = vmatpush3.bf16.xpose.msra.mxu1 %v1169_v30 }
 0x118   : > { %2140 = vmatprep.subr.bf16.mxu0 %v2360_v1  ;;  %2146 = vmatprep.subr.bf16.mxu1 %v2360_v1 }
 0x11e   : > { %2131 = vmatmul.mubr.msk.bf16.vlgmr.msra.gmra.mrb[28].mxu0 %vm1026_vm3, %v1015_v33  ;;  %2137 = vmatmul.mubr.msk.bf16.vlgmr.msra.gmra.mrb[28].mxu1 %vm1026_vm3, %v1016_v34 }
 0x11f   : > { %2142 = vmatprep.mubr.msk.bf16.mxu0 %vm2362_vm1, %v2360_v1  ;;  %2148 = vmatprep.mubr.msk.bf16.mxu1 %vm2362_vm1, %v2360_v1  ;;  %v833_v35 = vpop.f32.mrb[16].mxu0  ;;  %v891_v36 = vpop.f32.mrb[16].mxu1 }
 0x120   : > { %v1021_v37 = vpack.c.bf16 %v833_v35, %v833_v35  ;;  %v2084_v38 = vpop.f32.mrb[17].mxu0  ;;  %v1022_v39 = vpack.c.bf16 %v891_v36, %v891_v36  ;;  %v2094_v40 = vpop.f32.mrb[17].mxu1 }
 0x121   : > { %v836_v41 = vpop.f32.mrb[18].mxu0  ;;  %v894_v42 = vpop.f32.mrb[18].mxu1 }
 0x122   : > { %v1264_v43 = vsel %vm1262_vm4, %v1021_v37, 0  ;;  %v2085_v44 = vpop.f32.mrb[19].mxu0  ;;  %v1310_v45 = vsel %vm1262_vm4, %v1022_v39, 0  ;;  %v2095_v46 = vpop.f32.mrb[19].mxu1 }
 0x123   : > { %2141 = vmatpush3.bf16.msra.mxu0 %v1264_v43  ;;  %2147 = vmatpush3.bf16.msra.mxu1 %v1310_v45 }
 0x124   : > { %2152 = vmatprep.subr.bf16.mxu0 %v2360_v1  ;;  %2158 = vmatprep.subr.bf16.mxu1 %v2360_v1 }
 0x12b   : > { %v2694_v47 = vpop.f32.mrb[20].mxu0  ;;  %v2696_v48 = vpop.f32.mrb[20].mxu1 }
 0x12c   : > { %v2104_v49 = vpop.f32.mrb[21].mxu0  ;;  %v2114_v50 = vpop.f32.mrb[21].mxu1  ;;  %v1023_v41 = vpack.c.bf16 %v2694_v47, %v2694_v47 }
 0x12d   : > { %v952_v51 = vpop.f32.mrb[22].mxu0  ;;  %v1010_v52 = vpop.f32.mrb[22].mxu1  ;;  %v1024_v49 = vpack.c.bf16 %v2696_v48, %v2696_v48 }
 0x12e   : > { %v2105_v53 = vpop.f32.mrb[23].mxu0  ;;  %v2115_v54 = vpop.f32.mrb[23].mxu1  ;;  %v1356_v46 = vsel %vm1262_vm4, %v1023_v41, 0 }
 0x12f   : > { %v1402_v52 = vsel %vm1262_vm4, %v1024_v49, 0 }
 0x1e5   : > { %v1067_v56 = vpop.f32.mrb[24].mxu0  ;;  %v1113_v57 = vpop.f32.mrb[24].mxu1 }
 0x1e6   : > { %v1068_v58 = vadd.f32 %v1067_v56, %v1025_v55  ;;  %v2120_v59 = vpop.f32.mrb[25].mxu0  ;;  %v2126_v60 = vpop.f32.mrb[25].mxu1  ;;  %v1114_v63 = vadd.f32 %v1113_v57, %v1025_v55 }
 0x1e7   : > { %v1070_v61 = vpop.f32.mrb[26].mxu0  ;;  %v1116_v62 = vpop.f32.mrb[26].mxu1  ;;  %v1449_v60 = vld [vmem:[%s2844_s3 + $0x4] sm:$0xf] }
 0x1e8   : > { %v2121_v0 = vpop.f32.mrb[27].mxu0  ;;  %v2127_v2 = vpop.f32.mrb[27].mxu1  ;;  %v1211_v3 = vsel %vm1026_vm3, %v1068_v58, -inf  ;;  %v1214_v4 = vsel %vm1026_vm3, %v1114_v63, -inf  ;;  %v1502_v61 = vsel %vm1262_vm4, %v1449_v60, 0 }
 0x1e9   : > { %1212 = vmax.xlane.f32.xlu0 %v1211_v3  ;;  %v1450_v62 = vld [vmem:[%s2844_s3 + $0x8] sm:$0xf] }
 0x1ea   : > { %v1548_v3 = vsel %vm1262_vm4, %v1450_v62, 0 }
 0x1ed   : > { %1215 = vmax.xlane.f32.xlu0 %v1214_v4 }
 0x1f1   : > { %v1159_v5 = vpop.f32.mrb[28].mxu0  ;;  %v1205_v6 = vpop.f32.mrb[28].mxu1 }
 0x1f2   : > { %v1160_v7 = vadd.f32 %v1159_v5, %v1025_v55  ;;  %v2132_v8 = vpop.f32.mrb[29].mxu0  ;;  %v2138_v9 = vpop.f32.mrb[29].mxu1  ;;  %v1206_v13 = vadd.f32 %v1205_v6, %v1025_v55  ;;  %v1451_v5 = vld [vmem:[%s2844_s3 + $0xc] sm:$0xf] }
 0x1f3   : > { %v1162_v10 = vpop.f32.mrb[30].mxu0  ;;  %v1208_v11 = vpop.f32.mrb[30].mxu1 }
 0x1f4   : > { %v2133_v14 = vpop.f32.mrb[31].mxu0  ;;  %v2139_v15 = vpop.f32.mrb[31].mxu1  ;;  %v1217_v16 = vsel %vm1026_vm3, %v1160_v7, -inf  ;;  %v1220_v17 = vsel %vm1026_vm3, %v1206_v13, -inf  ;;  %v1594_v10 = vsel %vm1262_vm4, %v1451_v5, 0 }
 0x1f5   : > { %1218 = vmax.xlane.f32.xlu1 %v1217_v16 }
 0x1f9   : > { %1221 = vmax.xlane.f32.xlu1 %v1220_v17 }
 0x276   : > { %v1213_v18 = vpop.xlane.xlu0 %1212 }
 0x277   : > { %v1223_v19 = vsub.f32 %v1068_v58, %v1213_v18  ;;  %v1448_v58 = vld [vmem:[%s2844_s3] sm:$0xf] }
 0x278   : > { %v1456_v59 = vsel %vm1262_vm4, %v1448_v58, 0 }
 0x279   : > { %v1227_v20 = vmul.f32 1.442695, %v1223_v19 }
 0x27a   : > { %v1216_v21 = vpop.xlane.xlu0 %1215 }
 0x27b   : > { %2276 = vpow2.f32 %v1227_v20  ;;  %v1224_v22 = vsub.f32 %v1114_v63, %v1216_v21 }
 0x27d   : > { %v1229_v23 = vmul.f32 1.442695, %v1224_v22 }
 0x27f   : > { %2278 = vpow2.f32 %v1229_v23 }
 0x282   : > { %v1219_v24 = vpop.xlane.xlu1 %1218 }
 0x283   : > { %v1225_v25 = vsub.f32 %v1160_v7, %v1219_v24 }
 0x285   : > { %v2277_v26 = vpop.eup %2276  ;;  %v1231_v27 = vmul.f32 1.442695, %v1225_v25 }
 0x286   : > { %v1222_v28 = vpop.xlane.xlu1 %1221  ;;  %v1235_v29 = vsel %vm1026_vm3, %v2277_v26, 0.0 }
 0x287   : > { %2280 = vpow2.f32 %v1231_v27  ;;  %v1226_v30 = vsub.f32 %v1206_v13, %v1222_v28  ;;  %1236 = vadd.xlane.f32.xlu0 %v1235_v29 }
 0x289   : > { %v2279_v31 = vpop.eup %2278  ;;  %v1233_v32 = vmul.f32 1.442695, %v1226_v30 }
 0x28a   : > { %v1238_v33 = vsel %vm1026_vm3, %v2279_v31, 0.0 }
 0x28b   : > { %2282 = vpow2.f32 %v1233_v32  ;;  %1239 = vadd.xlane.f32.xlu1 %v1238_v33 }
 0x291   : > { %v2281_v34 = vpop.eup %2280 }
 0x292   : > { %v1241_v35 = vsel %vm1026_vm3, %v2281_v34, 0.0 }
 0x293   : > { %1242 = vadd.xlane.f32.xlu0 %v1241_v35 }
 0x295   : > { %v2283_v36 = vpop.eup %2282 }
 0x296   : > { %v1244_v37 = vsel %vm1026_vm3, %v2283_v36, 0.0 }
 0x297   : > { %1245 = vadd.xlane.f32.xlu1 %v1244_v37 }
 0x314   : > { %v1237_v38 = vpop.xlane.xlu0 %1236 }
 0x315   : > { %2284 = vrcp.f32 %v1237_v38 }
 0x318   : > { %v1240_v39 = vpop.xlane.xlu1 %1239 }
 0x319   : > { %2286 = vrcp.f32 %v1240_v39 }
 0x31f   : > { %v2285_v40 = vpop.eup %2284 }
 0x320   : > { %v1248_v42 = vmul.f32 %v2285_v40, %v2277_v26  ;;  %v1243_v43 = vpop.xlane.xlu0 %1242 }
 0x321   : > { %2288 = vrcp.f32 %v1243_v43  ;;  %v1908_v43 = vld [vmem:[%s2846_s5] ss:$0 sm:$0xff] }
 0x322   : > { %v1255_v44 = vpack.c.bf16 %v1248_v42, %v1248_v42 }
 0x323   : > { %v2287_v45 = vpop.eup %2286 }
 0x324   : > { %v1250_v50 = vmul.f32 %v2287_v45, %v2279_v31  ;;  %2143 = vmatmul.mubr.msk.bf16.vlgmr.msra.gmra.mrb[32].mxu0 %vm1026_vm3, %v1255_v44  ;;  %v1246_v51 = vpop.xlane.xlu1 %1245 }
 0x325   : > { %2153 = vmatpush3.bf16.msra.mxu0 %v1356_v46  ;;  %2290 = vrcp.f32 %v1246_v51  ;;  %2154 = vmatprep.mubr.msk.bf16.mxu0 %vm2362_vm1, %v2360_v1 }
 0x326   : > { %v1256_v47 = vpack.c.bf16 %v1250_v50, %v1250_v50  ;;  %2164 = vmatprep.subr.bf16.mxu0 %v2360_v1 }
 0x328   : > { %2149 = vmatmul.mubr.msk.bf16.vlgmr.msra.gmra.mrb[32].mxu1 %vm1026_vm3, %v1256_v47 }
 0x329   : > { %2159 = vmatpush3.bf16.msra.mxu1 %v1402_v52  ;;  %2160 = vmatprep.mubr.msk.bf16.mxu1 %vm2362_vm1, %v2360_v1 }
 0x32a   : > { %2170 = vmatprep.subr.bf16.mxu1 %v2360_v1 }
 0x32b   : > { %v2289_v48 = vpop.eup %2288 }
 0x32c   : > { %v1252_v53 = vmul.f32 %v2289_v48, %v2281_v34 }
 0x32e   : > { %v1257_v54 = vpack.c.bf16 %v1252_v53, %v1252_v53 }
 0x32f   : > { %v2291_v55 = vpop.eup %2290 }
 0x330   : > { %v1254_v56 = vmul.f32 %v2291_v55, %v2283_v36  ;;  %2155 = vmatmul.mubr.msk.bf16.vlgmr.msra.gmra.mrb[36].mxu0 %vm1026_vm3, %v1257_v54 }
 0x331   : > { %2166 = vmatprep.mubr.msk.bf16.mxu0 %vm2362_vm1, %v2360_v1  ;;  %2165 = vmatpush3.bf16.msra.mxu0 %v1456_v59 }
 0x332   : > { %v1258_v57 = vpack.c.bf16 %v1254_v56, %v1254_v56  ;;  %2176 = vmatprep.subr.bf16.mxu0 %v2360_v1  ;;  %v2274_v56 = vld [vmem:[%s2845_s4] sm:$0xff]  }
 0x334   : > { %2161 = vmatmul.mubr.msk.bf16.vlgmr.msra.gmra.mrb[36].mxu1 %vm1026_vm3, %v1258_v57  ;;  %v2275_v57 = vld [vmem:[%s2845_s4 + $0x8] sm:$0xff]  }
 0x335   : > { %2172 = vmatprep.mubr.msk.bf16.mxu1 %vm2362_vm1, %v2360_v1  ;;  %2171 = vmatpush3.bf16.msra.mxu1 %v1502_v61  ;;  %v1909_v61 = vld [vmem:[%s2846_s5 + $0x2] ss:$0 sm:$0xff] }
 0x336   : > { %2182 = vmatprep.subr.bf16.mxu1 %v2360_v1 }
 0x3f7   : > { %v1300_v63 = vpop.f32.mrb[32].mxu0 }
 0x3f8   : > { %v1444_v0 = vpack.c.bf16 %v1300_v63, %v1300_v63  ;;  %v2144_v2 = vpop.f32.mrb[33].mxu0  ;;  %v1910_v63 = vld [vmem:[%s2846_s5 + $0x3] ss:$0 sm:$0xff] }
 0x3f9   : > { %v1303_v4 = vpop.f32.mrb[34].mxu0 }
 0x3fa   : > { %v2145_v6 = vpop.f32.mrb[35].mxu0  ;;  %2167 = vmatmul.mubr.msk.bf16.vlgmr.msra.gmra.mrb[40].mxu0 %vm1026_vm3, %v1444_v0 }
 0x3fb   : > { %v1346_v7 = vpop.f32.mrb[32].mxu1  ;;  %2177 = vmatpush3.bf16.msra.mxu0 %v1548_v3  ;;  %2178 = vmatprep.mubr.msk.bf16.mxu0 %vm2362_vm1, %v2360_v1 }
 0x3fc   : > { %v1445_v8 = vpack.c.bf16 %v1346_v7, %v1346_v7  ;;  %v2150_v9 = vpop.f32.mrb[33].mxu1  ;;  %2188 = vmatprep.subr.bf16.mxu0 %v2360_v1 }
 0x3fd   : > { %v1349_v11 = vpop.f32.mrb[34].mxu1 }
 0x3fe   : > { %v2151_v13 = vpop.f32.mrb[35].mxu1  ;;  %2173 = vmatmul.mubr.msk.bf16.vlgmr.msra.gmra.mrb[40].mxu1 %vm1026_vm3, %v1445_v8 }
 0x3ff   : > { %2183 = vmatpush3.bf16.msra.mxu1 %v1594_v10  ;;  %2184 = vmatprep.mubr.msk.bf16.mxu1 %vm2362_vm1, %v2360_v1 }
 0x403   : > { %v1392_v14 = vpop.f32.mrb[36].mxu0 }
 0x404   : > { %v1446_v15 = vpack.c.bf16 %v1392_v14, %v1392_v14  ;;  %v2156_v16 = vpop.f32.mrb[37].mxu0 }
 0x405   : > { %v1395_v17 = vpop.f32.mrb[38].mxu0 }
 0x406   : > { %v2157_v18 = vpop.f32.mrb[39].mxu0  ;;  %2179 = vmatmul.mubr.msk.bf16.vlgmr.msra.gmra.mrb[44].mxu0 %vm1026_vm3, %v1446_v15 }
 0x407   : > { %v1438_v19 = vpop.f32.mrb[36].mxu1  ;;  %2192 = vmatprep.mubr.msk.bf16.mxu0 %vm2362_vm1, %v2360_v1  ;;  %2189 = vmatpush3.bf16.msra.mxu0 %v2274_v56 }
 0x408   : > { %v1447_v20 = vpack.c.bf16 %v1438_v19, %v1438_v19  ;;  %v2162_v21 = vpop.f32.mrb[37].mxu1  ;;  %2190 = vmatprep.subr.bf16.mxu0 %v2360_v1  ;;  %v1911_v1 = vld [vmem:[%s2846_s5 + $0x1] ss:$0 sm:$0xff] }
 0x409   : > { %v1441_v22 = vpop.f32.mrb[38].mxu1  ;;  %v1915_v21 = vld [vmem:[%s2846_s5 + $0x4] ss:$0 sm:$0xff] }
 0x40a   : > { %v2163_v23 = vpop.f32.mrb[39].mxu1  ;;  %2185 = vmatmul.mubr.msk.bf16.vlgmr.msra.gmra.mrb[44].mxu1 %vm1026_vm3, %v1447_v20 }
 0x40b   : > { %2191 = vmatpush3.bf16.msra.mxu0 %v2275_v57  ;;  %v1916_v23 = vld [vmem:[%s2846_s5 + $0x5] ss:$0 sm:$0xff] }
 0x4cd   : > { %v1492_v24 = vpop.f32.mrb[40].mxu0 }
 0x4ce   : > { %v2168_v25 = vpop.f32.mrb[41].mxu0  ;;  %v1637_v29 = vsel %vm1636_vm5, %v1492_v24, 0.0 }
 0x4cf   : > { %v1495_v26 = vpop.f32.mrb[42].mxu0 }
 0x4d0   : > { %v2169_v27 = vpop.f32.mrb[43].mxu0 }
 0x4d1   : > { %v1538_v28 = vpop.f32.mrb[40].mxu1 }
 0x4d2   : > { %v1638_v30 = vsel %vm1636_vm5, %v1538_v28, 0.0  ;;  %v2174_v31 = vpop.f32.mrb[41].mxu1 }
 0x4d3   : > { %v1639_v32 = vadd.f32 %v1638_v30, %v1637_v29  ;;  %v1541_v33 = vpop.f32.mrb[42].mxu1 }
 0x4d4   : > { %v2175_v34 = vpop.f32.mrb[43].mxu1 }
 0x4d9   : > { %v1584_v35 = vpop.f32.mrb[44].mxu0 }
 0x4da   : > { %v1640_v36 = vsel %vm1636_vm5, %v1584_v35, 0.0  ;;  %v2180_v37 = vpop.f32.mrb[45].mxu0 }
 0x4db   : > { %v1641_v38 = vadd.f32 %v1640_v36, %v1639_v32  ;;  %v1587_v39 = vpop.f32.mrb[46].mxu0 }
 0x4dc   : > { %v2181_v40 = vpop.f32.mrb[47].mxu0 }
 0x4dd   : > { %v1630_v41 = vpop.f32.mrb[44].mxu1 }
 0x4de   : > { %v1642_v42 = vsel %vm1636_vm5, %v1630_v41, 0.0  ;;  %v2186_v44 = vpop.f32.mrb[45].mxu1 }
 0x4df   : > { %v1643_v45 = vadd.f32 %v1642_v42, %v1641_v38  ;;  %v1633_v46 = vpop.f32.mrb[46].mxu1 }
 0x4e0   : > { %v2187_v49 = vpop.f32.mrb[47].mxu1 }
 0x4e1   : > { %v1649_v50 = vadd.f32 %v1908_v43, %v1643_v45 }
 0x4e3   : > { %v1650_v51 = vadd.f32 %v1649_v50, %v2487_v12 }
 0x4e5   : > { %v1653_v47 = vsel %vm1636_vm5, %v1650_v51, 0.0 }
 0x4e6   : > { %1654 = vadd.xlane.f32.xlu0 %v1653_v47 }
 0x573   : > { %v1655_v52 = vpop.xlane.xlu0 %1654 }
 0x574   : > { %v1657_v48 = vmul.f32 0.03125, %v1655_v52 }
 0x576   : > { %v1658_v53 = vsub.f32 %v1650_v51, %v1657_v48 }
 0x578   : > { %v1659_v54 = vmul.f32 %v1658_v53, %v1658_v53 }
 0x57a   : > { %v1660_v55 = vsel %vm1636_vm5, %v1659_v54, 0.0 }
 0x57b   : > { %1661 = vadd.xlane.f32.xlu1 %v1660_v55 }
 0x608   : > { %v1662_v12 = vpop.xlane.xlu1 %1661 }
 0x609   : > { %v1663_v58 = vmul.f32 0.03125, %v1662_v12 }
 0x60b   : > { %v1664_v59 = vadd.f32 1e-05, %v1663_v58 }
 0x60d   : > { %2292 = vrsqrt.f32 %v1664_v59 }
 0x617   : > { %v2293_v60 = vpop.eup %2292 }
 0x618   : > { %v1666_v62 = vmul.f32 %v2293_v60, %v1658_v53 }
 0x61a   : > { %v1671_v0 = vmul.f32 %v1909_v61, %v1666_v62 }
 0x61c   : > { %v1676_v2 = vadd.f32 %v1910_v63, %v1671_v0 }
 0x61e   : > { %v1677_v3 = vpack.c.bf16 %v1676_v2, %v1676_v2 }
 0x620   : > { %2193 = vmatmul.mubr.msk.bf16.vlgmr.msra.gmra.mrb[48].mxu0 %vm1636_vm5, %v1677_v3 }
 0x6f3   : > { %v1736_v4 = vpop.f32.mrb[48].mxu0 }
 0x6f4   : > { %v1737_v5 = vadd.f32 %v1911_v1, %v1736_v4  ;;  %v2194_v6 = vpop.f32.mrb[49].mxu0 }
 0x6f5   : > { %v1739_v7 = vpop.f32.mrb[50].mxu0 }
 0x6f6   : > { %v1742_v8 = vmax.f32 %v1737_v5, 0.0  ;;  %v2195_v9 = vpop.f32.mrb[51].mxu0 }
 0x6f8   : > { %v1745_v10 = vsel %vm1636_vm5, %v1742_v8, 0.0 }
 0x6f9   : > { %1746 = vadd.xlane.f32.xlu0 %v1745_v10 }
 0x786   : > { %v1747_v11 = vpop.xlane.xlu0 %1746 }
 0x787   : > { %v1748_v13 = vmul.f32 0.03125, %v1747_v11 }
 0x789   : > { %v1749_v14 = vsub.f32 %v1742_v8, %v1748_v13 }
 0x78b   : > { %v1750_v15 = vmul.f32 %v1749_v14, %v1749_v14 }
 0x78d   : > { %v1751_v16 = vsel %vm1636_vm5, %v1750_v15, 0.0 }
 0x78e   : > { %1752 = vadd.xlane.f32.xlu1 %v1751_v16 }
 0x81b   : > { %v1753_v17 = vpop.xlane.xlu1 %1752 }
 0x81c   : > { %v1754_v18 = vmul.f32 0.03125, %v1753_v17 }
 0x81e   : > { %v1755_v19 = vadd.f32 1e-05, %v1754_v18 }
 0x820   : > { %2294 = vrsqrt.f32 %v1755_v19 }
 0x82a   : > { %v2295_v20 = vpop.eup %2294 }
 0x82b   : > { %v1757_v22 = vmul.f32 %v2295_v20, %v1749_v14 }
 0x82d   : > { %v1762_v24 = vmul.f32 %v1915_v21, %v1757_v22 }
 0x82f   : > { %v1767_v25 = vadd.f32 %v1916_v23, %v1762_v24 }
 0x831   : > { %1768 = vst.msk [vmem:[%s242_s10] sm:$0xff] %vm1636_vm5, %v1767_v25 }
 0x832   : > { %2309 = shalt.err (!%p2306_p3)
}
 0x833   : > { %s2310_s18 = scalar_lea.hbm %s2798_s14, 128  ;;  %s2314_s28 = scalar_lea.hbm %s2847_s6, 256 }
 0x834   : > { %p2311_p4 = scmp.ne.s32.totalorder %s2798_s14, %s2310_s18  ;;  %p2315_p9 = scmp.lt.u32.totalorder %s2798_s14, %s2847_s6 }
 0x835   : > { %p2316_p10 = scmp.lt.u32.totalorder %s2314_s28, %s2310_s18  ;;  %p2318_p12 = scmp.lt.u32.totalorder %s2310_s18, %s2798_s14 }
 0x836   : > { %p2312_p7 = pnand %p2311_p4, %p2437_p5 }
 0x837   : > { %p2317_p11 = por %p2316_p10, %p2315_p9 }
 0x838   : > { %p2313_p8 = pneg %p2312_p7 }
 0x839   : > { %p2319_p13 = por %p2318_p12, %p2317_p11 }
 0x83b   : > { %p2320_p0 = pnand %p2319_p13, %p2313_p8 }
 0x83d   : > { %2323 = shalt.err (!%p2320_p0)
}
 0x83e   : > { %2196 = dma.vmem_to_hbm [thread:$0]  (%p2437_p5), %s2800_s11, 128, %s2798_s14, %s1770_s15  }
 0x83f PF: > { %p2202_p1 = scmp.ge.s32.totalorder %s2358_s24, 2  ;;  %s1795_s10 = sand.u32 1, %s2346_s21  }
 0x840   : > { %s1796_s12 = scalar_lea.sflag [#allocation3], %s1795_s10 }
 0x841   : > { %p2199_p2 = pnand %p2202_p1, %p2441_p6 }
 0x843   : > { %2341 = dma.done.wait (!%p2199_p2), %s1796_s12, 128  }
 0x844   : > { %2343 = vsyncadd (!%p2199_p2), %s1796_s12, 4294967168  ;;  %p16_p3 = scmp.ge.s32.totalorder %s2424_s27, 4   ;;  %s2850_s21 = smov %s2350_s22 }
 0x845   : > { %s2851_s22 = smov %s2354_s23  ;;  %s2852_s23 = smov %s2435_s30 }
 0x846   : > { %s2853_s24 = smov %s2424_s27  ;;  %18 = sbr.rel (!%p16_p3) target bundleno = 3 (0x3), region = 79 }
 0x84d   :  { %1801 = vsyncpa [#allocation3], 1 }
 0x84e   :  { %1803 = vsyncpa [#allocation3 + $0x1], 1 }

</bundles_post_ra>
